<compile_context>
chip_gen: v5e
topology: v5e:2x2
jax: 0.10.0
libtpu: 0.0.40
codegen_flags: <defaults>
</compile_context>

<pallas_src>
import functools

import jax
import jax.numpy as jnp
from jax.experimental import pallas as pl
from jax.experimental.pallas import tpu as pltpu


# --------------------------------------------------------------------------- #
# Generation-aware planning helpers
# --------------------------------------------------------------------------- #
def _vmem_plan():
    """Return (working_budget_bytes, vmem_limit_bytes, lane_cap) for this chip."""
    try:
        cap = int(pltpu.get_tpu_info().vmem_capacity_bytes)
    except Exception:  # no TPU info available at trace time -> conservative default
        cap = 64 * 1024 * 1024
    cap = max(cap, 32 * 1024 * 1024)
    budget = max(8 << 20, (cap * 3) // 8)          # ~48 MiB on 128-MiB parts, ~24 MiB on v7x
    limit = max(budget + (8 << 20), (cap * 5) // 8)
    limit = min(limit, cap - (4 << 20))
    lane_cap = 8192 if cap >= (96 << 20) else 4096
    return budget, int(limit), lane_cap


def _plan_lane_tile(hw, bytes_per_lane, budget, lane_cap, override=None):
    """Lane (last-dim) tile: a multiple of 128 or the full extent. Never pads."""
    if override is not None:
        return int(override)
    max_lanes = min(lane_cap, max(128, budget // max(1, bytes_per_lane)))
    if hw <= max_lanes:
        return hw                                   # full-extent block is always legal
    return max(128, (max_lanes // 128) * 128)       # ragged boundary block handled by masks


# --------------------------------------------------------------------------- #
# Fused single-pass kernel (small feature maps): stats + concat in one call
# --------------------------------------------------------------------------- #
def _fused_kernel(x_ref, o_ref, *, c, cg, nf, eps, inv_denom):
    # x_ref: (G, 1, C, HW) block of x.reshape(G, M, C, HW); o_ref: (G, 1, C+F, HW)
    x = x_ref[...]
    o_ref[:, :, :c, :] = x
    g = x.shape[0]
    hw = x.shape[3]
    rows = []
    for f in range(nf):
        xs = x[:, :, f * cg:(f + 1) * cg, :].astype(jnp.float32)   # (G, 1, Cg, HW)
        mu = jnp.mean(xs, axis=0)                                  # (1, Cg, HW)
        var = jnp.mean(xs * xs, axis=0) - mu * mu                  # biased (divisor G)
        std = jnp.sqrt(jnp.maximum(var, 0.0) + eps)
        stat = (jnp.sum(std) * inv_denom).astype(o_ref.dtype)
        rows.append(jnp.broadcast_to(stat, (g, 1, 1, hw)))
    o_ref[:, :, c:, :] = rows[0] if nf == 1 else jnp.concatenate(rows, axis=2)


# --------------------------------------------------------------------------- #
# Two-pass path, pass 1: per-(m, f) mean group-stddev scalar
# --------------------------------------------------------------------------- #
def _stats_kernel(x_ref, o_ref, acc_ref, *, hw, tile_hw, eps, masked):
    # x_ref  : (G, 1, Cg, tile_hw) block of x.reshape(G, M*F, Cg, HW)
    # o_ref  : (1, 1, 8, 128) f32 output block, resident across the tile axis
    # acc_ref: (1, 1, tile_hw) f32 VMEM scratch holding lane-shaped partial sums
    t = pl.program_id(2)

    @pl.when(t == 0)
    def _init():
        acc_ref[...] = jnp.zeros_like(acc_ref)

    x = x_ref[...].astype(jnp.float32)                    # (G, 1, Cg, T)
    mu = jnp.mean(x, axis=0)                              # (1, Cg, T)
    var = jnp.mean(x * x, axis=0) - mu * mu               # biased (divisor G)
    std = jnp.sqrt(jnp.maximum(var, 0.0) + eps)           # (1, Cg, T)

    if masked:  # ragged boundary block: zero out lanes beyond the true HW extent
        base = (pl.program_id(1) * pl.num_programs(2) + t) * tile_hw
        lane = jax.lax.broadcasted_iota(jnp.int32, std.shape, 2)
        std = jnp.where(base + lane < hw, std, 0.0)

    # Defer the expensive cross-lane reduce: per tile only the Cg axis is reduced.
    acc_ref[...] += jnp.sum(std, axis=1, keepdims=True)   # (1, 1, T)

    @pl.when(t == pl.num_programs(2) - 1)
    def _finalize():
        o_ref[...] = jnp.broadcast_to(jnp.sum(acc_ref[...]), o_ref.shape)


# --------------------------------------------------------------------------- #
# Two-pass path, pass 2: z = concat([x, broadcast(stats)], channel axis)
# --------------------------------------------------------------------------- #
def _assemble_kernel(x_ref, stats_ref, o_ref, *, c, nf, m):
    # x_ref: (1, C, tile)   stats_ref: (M*F,) f32 in SMEM   o_ref: (1, C+F, tile)
    i = pl.program_id(0)                                  # batch index b = g_i * M + m_i
    mi = i % m
    tile = o_ref.shape[2]
    o_ref[:, :c, :] = x_ref[...]
    rows = [jnp.broadcast_to(stats_ref[mi * nf + f].astype(o_ref.dtype), (1, 1, tile))
            for f in range(nf)]
    o_ref[:, c:, :] = rows[0] if nf == 1 else jnp.concatenate(rows, axis=1)


# --------------------------------------------------------------------------- #
# Wrapper
# --------------------------------------------------------------------------- #
def stddev_layer(x: jax.Array, group_size: int = 4, num_new_features: int = 1,
                 eps: float = 1e-8, *, force_two_pass: bool = False,
                 tile_override=None) -> jax.Array:
    """StddevLayer forward. x is NCHW; returns (B, C + num_new_features, H, W)."""
    b, c, h, w = x.shape
    g = min(group_size, b)
    nf = num_new_features
    assert b % g == 0, "batch must be divisible by the (clamped) group size"
    assert c % nf == 0, "channels must be divisible by num_new_features"
    m = b // g
    cg = c // nf
    hw = h * w
    itemsize = jnp.dtype(x.dtype).itemsize
    inv_denom = 1.0 / float(cg * hw)
    budget, vmem_limit, lane_cap = _vmem_plan()

    # ---------------- fused single-pass path (one HBM read + one write) -------
    fused_bytes = hw * (2 * g * c * itemsize              # double-buffered input block
                        + 2 * g * (c + nf) * itemsize     # double-buffered output block
                        + 2 * g * cg * 4                  # f32 upcast + squares (per f)
                        + 8 * cg * 4)                     # reduction temporaries
    if not force_two_pass and fused_bytes <= budget:
        x4 = x.reshape(g, m, c, hw)
        z4 = pl.pallas_call(
            functools.partial(_fused_kernel, c=c, cg=cg, nf=nf, eps=eps,
                              inv_denom=inv_denom),
            out_shape=jax.ShapeDtypeStruct((g, m, c + nf, hw), x.dtype),
            grid_spec=pltpu.PrefetchScalarGridSpec(
                num_scalar_prefetch=0, grid=(m,),
                in_specs=[pl.BlockSpec((g, 1, c, hw), lambda j: (0, j, 0, 0))],
                out_specs=pl.BlockSpec((g, 1, c + nf, hw), lambda j: (0, j, 0, 0))),
            compiler_params=pltpu.CompilerParams(
                dimension_semantics=("parallel",),
                vmem_limit_bytes=vmem_limit),
            cost_estimate=pl.CostEstimate(
                flops=7 * b * c * hw,
                transcendentals=(b // g) * c * hw,
                bytes_accessed=(b * c + b * (c + nf)) * hw * itemsize),
        )(x4)
        return z4.reshape(b, c + nf, h, w)

    # -------------------------- two-pass path ---------------------------------
    # pass 1: per-(m, f) mean group-stddev scalars
    bpl_a = (2 * g * cg * itemsize        # double-buffered input block
             + 2 * g * cg * 4             # f32 upcast + squares
             + 8 * cg * 4 + 8)            # reduction temps + lane accumulator
    tile_a = _plan_lane_tile(hw, bpl_a, budget, lane_cap, tile_override)
    n_tiles_a = pl.cdiv(hw, tile_a)
    masked = (hw % tile_a) != 0

    # Split the tile axis into a leading parallel factor so v7x's second core has
    # work when M*F == 1 (one partial accumulator per part, summed on the host).
    split = 2 if (m * nf == 1 and n_tiles_a >= 2 and n_tiles_a % 2 == 0) else 1
    npp = n_tiles_a // split

    x4 = x.reshape(g, m * nf, cg, hw)
    stats_raw = pl.pallas_call(
        functools.partial(_stats_kernel, hw=hw, tile_hw=tile_a, eps=eps, masked=masked),
        out_shape=jax.ShapeDtypeStruct((m * nf, split, 8, 128), jnp.float32),
        grid_spec=pltpu.PrefetchScalarGridSpec(
            num_scalar_prefetch=0,
            grid=(m * nf, split, npp),
            in_specs=[pl.BlockSpec((g, 1, cg, tile_a),
                                   lambda j, p, t: (0, j, 0, p * npp + t))],
            out_specs=pl.BlockSpec((1, 1, 8, 128), lambda j, p, t: (j, p, 0, 0)),
            scratch_shapes=[pltpu.VMEM((1, 1, tile_a), jnp.float32)]),
        compiler_params=pltpu.CompilerParams(
            dimension_semantics=("parallel", "parallel", "arbitrary"),
            vmem_limit_bytes=vmem_limit),
        cost_estimate=pl.CostEstimate(
            flops=7 * b * c * hw,
            transcendentals=(b // g) * c * hw,
            bytes_accessed=b * c * hw * itemsize + m * nf * split * 8 * 128 * 4),
    )(x4)
    stats = (stats_raw[:, :, 0, 0].sum(axis=1) * inv_denom).astype(jnp.float32)  # (M*F,)

    # pass 2: assemble [x, broadcast stddev feature maps]
    bpl_b = 2 * itemsize * (2 * c + nf) + (c + nf) * itemsize
    tile_b = _plan_lane_tile(hw, bpl_b, budget, lane_cap, tile_override)
    n_tiles_b = pl.cdiv(hw, tile_b)

    x3 = x.reshape(b, c, hw)
    z3 = pl.pallas_call(
        functools.partial(_assemble_kernel, c=c, nf=nf, m=m),
        out_shape=jax.ShapeDtypeStruct((b, c + nf, hw), x.dtype),
        grid_spec=pltpu.PrefetchScalarGridSpec(
            num_scalar_prefetch=0,
            grid=(b, n_tiles_b),
            in_specs=[
                pl.BlockSpec((1, c, tile_b), lambda i, t: (i, 0, t)),
                pl.BlockSpec(memory_space=pltpu.MemorySpace.SMEM),
            ],
            out_specs=pl.BlockSpec((1, c + nf, tile_b), lambda i, t: (i, 0, t))),
        compiler_params=pltpu.CompilerParams(
            dimension_semantics=("parallel", "parallel"),
            vmem_limit_bytes=vmem_limit),
        cost_estimate=pl.CostEstimate(
            flops=b * nf * hw,
            transcendentals=0,
            bytes_accessed=(b * c + b * (c + nf)) * hw * itemsize),
    )(x3, stats)
    return z3.reshape(b, c + nf, h, w)


# --------------------------------------------------------------------------- #
# Pure-JAX reference (mirrors the PyTorch module)
# --------------------------------------------------------------------------- #
def stddev_layer_reference(x, group_size=4, num_new_features=1, eps=1e-8):
    b, c, h, w = x.shape
    g = min(group_size, b)
    nf = num_new_features
    y = x.reshape(g, -1, nf, c // nf, h, w)
    y = y - jnp.mean(y, axis=0, keepdims=True)
    y = jnp.mean(y * y, axis=0)
    y = jnp.sqrt(y + eps)
    y = jnp.mean(y, axis=(2, 3, 4), keepdims=True)        # (M, F, 1, 1, 1)
    y = jnp.squeeze(y, axis=3)                            # (M, F, 1, 1)
    y = jnp.broadcast_to(y[None], (g, b // g, nf, h, w))
    y = y.reshape(b, nf, h, w).astype(x.dtype)
    return jnp.concatenate([x, y], axis=1)


if __name__ == "__main__":
    key = jax.random.PRNGKey(0)
    k1, k2, k3, k4 = jax.random.split(key, 4)

    # 1) module defaults, small shape (group_size clamps to batch=2) -> fused path.
    x1 = jax.random.normal(k1, (2, 4, 16, 16), dtype=jnp.float32)
    out1 = jax.block_until_ready(stddev_layer(x1, group_size=4, num_new_features=1))
    ref1 = stddev_layer_reference(x1, group_size=4, num_new_features=1)
    assert out1.shape == (2, 5, 16, 16) and out1.dtype == x1.dtype
    assert jnp.allclose(out1, ref1, atol=1e-5, rtol=1e-5), "mismatch vs reference (test 1)"

    # 2) multiple groups, 2 new features, ragged (non-128) HW -> fused, full-extent lanes.
    x2 = jax.random.normal(k2, (8, 16, 9, 9), dtype=jnp.float32)
    out2 = jax.block_until_ready(stddev_layer(x2, group_size=4, num_new_features=2))
    ref2 = stddev_layer_reference(x2, group_size=4, num_new_features=2)
    assert out2.shape == (8, 18, 9, 9) and out2.dtype == x2.dtype
    assert jnp.allclose(out2, ref2, atol=1e-5, rtol=1e-5), "mismatch vs reference (test 2)"

    # 3) two-pass path with a ragged lane tile: exercises boundary-block masking in
    #    the stats pass, dropped OOB output writes in the assemble pass, and the
    #    megacore split of the stats pass (m*nf == 1, 2 tiles).
    x3 = jax.random.normal(k3, (2, 4, 24, 16), dtype=jnp.float32)
    out3 = jax.block_until_ready(
        stddev_layer(x3, group_size=4, num_new_features=1,
                     force_two_pass=True, tile_override=256))
    ref3 = stddev_layer_reference(x3, group_size=4, num_new_features=1)
    assert out3.shape == (2, 5, 24, 16)
    assert jnp.allclose(out3, ref3, atol=1e-5, rtol=1e-5), "mismatch vs reference (test 3)"

    # 4) two-pass path with several groups and 2 new features (1-D SMEM stats table).
    x4 = jax.random.normal(k4, (4, 8, 16, 16), dtype=jnp.float32)
    out4 = jax.block_until_ready(
        stddev_layer(x4, group_size=2, num_new_features=2, force_two_pass=True))
    ref4 = stddev_layer_reference(x4, group_size=2, num_new_features=2)
    assert out4.shape == (4, 10, 16, 16)
    assert jnp.allclose(out4, ref4, atol=1e-5, rtol=1e-5), "mismatch vs reference (test 4)"

    print("KERNEL_OK")
</pallas_src>

<mosaic_0001>
module attributes {stable_mosaic.version = 11 : i64} {
  func.func @_fused_kernel(%arg0: i32, %arg1: memref<2x1x4x256xf32, #tpu.memory_space<vmem>>, %arg2: memref<2x1x5x256xf32, #tpu.memory_space<vmem>>) attributes {dimension_semantics = [#tpu.dimension_semantics<parallel>], iteration_bounds = array<i64: 1>, scalar_prefetch = 0 : i64, scratch_operands = 0 : i64, tpu.core_type = #tpu.core_type<tc>, window_params = [{transform_indices = @transform_0, window_bounds = array<i64: 2, 1, 4, 256>}, {transform_indices = @transform_1, window_bounds = array<i64: 2, 1, 5, 256>}]} {
    %c0 = arith.constant 0 : index
    %c0_0 = arith.constant 0 : index
    %c0_1 = arith.constant 0 : index
    %c0_2 = arith.constant 0 : index
    %0 = vector.load %arg1[%c0, %c0_0, %c0_1, %c0_2] : memref<2x1x4x256xf32, #tpu.memory_space<vmem>>, vector<2x1x4x256xf32>
    %c0_3 = arith.constant 0 : index
    %c0_4 = arith.constant 0 : index
    %c0_5 = arith.constant 0 : index
    %c0_6 = arith.constant 0 : index
    %1 = vector.load %arg2[%c0_3, %c0_4, %c0_5, %c0_6] : memref<2x1x5x256xf32, #tpu.memory_space<vmem>>, vector<2x1x4x256xf32>
    tpu.vector_store %arg2[%c0_3, %c0_4, %c0_5, %c0_6], %0 {strides = array<i32>} : memref<2x1x5x256xf32, #tpu.memory_space<vmem>>, vector<2x1x4x256xf32>,
    %cst = arith.constant dense<0.000000e+00> : vector<1x4x256xf32>
    %2 = vector.multi_reduction <add>, %0, %cst [0] : vector<2x1x4x256xf32> to vector<1x4x256xf32>
    %cst_7 = arith.constant 2.000000e+00 : f32
    %3 = vector.broadcast %cst_7 : f32 to vector<1x4x256xf32>
    %4 = arith.divf %2, %3 : vector<1x4x256xf32>
    %5 = arith.mulf %0, %0 : vector<2x1x4x256xf32>
    %cst_8 = arith.constant dense<0.000000e+00> : vector<1x4x256xf32>
    %6 = vector.multi_reduction <add>, %5, %cst_8 [0] : vector<2x1x4x256xf32> to vector<1x4x256xf32>
    %cst_9 = arith.constant 2.000000e+00 : f32
    %7 = vector.broadcast %cst_9 : f32 to vector<1x4x256xf32>
    %8 = arith.divf %6, %7 : vector<1x4x256xf32>
    %9 = arith.mulf %4, %4 : vector<1x4x256xf32>
    %10 = arith.subf %8, %9 : vector<1x4x256xf32>
    %cst_10 = arith.constant 0.000000e+00 : f32
    %11 = vector.broadcast %cst_10 : f32 to vector<1x4x256xf32>
    %12 = arith.maximumf %10, %11 : vector<1x4x256xf32>
    %cst_11 = arith.constant 9.99999993E-9 : f32
    %13 = vector.broadcast %cst_11 : f32 to vector<1x4x256xf32>
    %14 = arith.addf %12, %13 : vector<1x4x256xf32>
    %15 = math.sqrt %14 : vector<1x4x256xf32>
    %16 = vector.shape_cast %15 : vector<1x4x256xf32> to vector<1x1x4x256xf32>
    %cst_12 = arith.constant dense<0.000000e+00> : vector<1xf32>
    %17 = vector.multi_reduction <add>, %16, %cst_12 [1, 2, 3] : vector<1x1x4x256xf32> to vector<1xf32>
    %18 = vector.shape_cast %17 : vector<1xf32> to vector<1x1x1x1xf32>
    %19 = vector.extract %18[0, 0, 0, 0] : f32 from vector<1x1x1x1xf32>
    %cst_13 = arith.constant 9.765625E-4 : f32
    %20 = arith.mulf %19, %cst_13 : f32
    %21 = vector.broadcast %20 : f32 to vector<2x1x1x256xf32>
    %c0_14 = arith.constant 0 : index
    %c0_15 = arith.constant 0 : index
    %c4 = arith.constant 4 : index
    %c0_16 = arith.constant 0 : index
    %22 = vector.load %arg2[%c0_14, %c0_15, %c4, %c0_16] : memref<2x1x5x256xf32, #tpu.memory_space<vmem>>, vector<2x1x1x256xf32>
    tpu.vector_store %arg2[%c0_14, %c0_15, %c4, %c0_16], %21 {strides = array<i32>} : memref<2x1x5x256xf32, #tpu.memory_space<vmem>>, vector<2x1x1x256xf32>,
    return
  }
  func.func @transform_0(%arg0: i32) -> (i32, i32, i32, i32) {
    %c0_i32 = arith.constant 0 : i32
    %c0_i32_0 = arith.constant 0 : i32
    %c0_i32_1 = arith.constant 0 : i32
    %c0_i32_2 = arith.constant 0 : i32
    return %c0_i32, %arg0, %c0_i32_0, %c0_i32_1 : i32, i32, i32, i32
  }
  func.func @transform_1(%arg0: i32) -> (i32, i32, i32, i32) {
    %c0_i32 = arith.constant 0 : i32
    %c0_i32_0 = arith.constant 0 : i32
    %c0_i32_1 = arith.constant 0 : i32
    %c0_i32_2 = arith.constant 0 : i32
    return %c0_i32, %arg0, %c0_i32_0, %c0_i32_1 : i32, i32, i32, i32
  }
}

</mosaic_0001>

<bundles_post_ra>
// kernel: tpu_custom_call.1
= control target key start
LH: loop header
LB: loop body
LE: loop exit
PB: predicated region body
PF: predicated region fallthrough
CT: control target
= control target key end

     0   :  { %6 = vsyncpa [#allocation3], 0  ;;  %s194_s9 = smov [#allocation2]   ;;  %s195_s11 = smov 128   ;;  %s239_s0 = inlined_call_operand.hbm [shape: f32[2,1,4,256], index: 0, kind: input, shape index: {}]   ;;  %s240_s1 = inlined_call_operand.vmem [shape: f32[2,1,5,256], index: 1, kind: output, shape index: {}]  }
   0x1   :  { %s11_s8 = sshll.u32 %s239_s0, 4  ;;  %s13_s10 = sshll.u32 %s194_s9, 4  ;;  %s12_s8 = int_to_ptr.hbm [resolvable:$true] %s11_s8  ;;  %s14_s10 = int_to_ptr.vmem [resolvable:$true] %s13_s10 }
   0x2   :  { %s196_s12 = smov 8  }
   0x3   :  { %19 = dma.hbm_to_vmem [thread:$0]  %s12_s8, 256, %s14_s10, [#allocation3], %s195_s11, %s195_s11, %s196_s12  }
   0x4   :  { %192 = dma.done.wait [#allocation3], 256  }
   0x5   :  { %193 = vsyncadd [#allocation3], 4294967040  ;;  %v24_v0 = vld [vmem:[#allocation2] sm:$0xff]  ;;  %v25_v1 = vld [vmem:[#allocation2 + $0x8] sm:$0xff]  ;;  %v197_v2 = vmov 2.0   ;;  %vm54_vm0 = vcmask 1043456  }
   0x6   :  { %28 = vst [vmem:[#allocation1] ss:$2 sm:$0xff] %v24_v0  ;;  %162 = vrcp.f32 %v197_v2  ;;  %v70_v11 = vmul.f32 %v24_v0, %v24_v0  ;;  %v71_v12 = vmul.f32 %v25_v1, %v25_v1 }
   0x7   :  { %32 = vst [vmem:[#allocation1 + $0x10] ss:$2 sm:$0xff] %v25_v1 }
   0xc   :  { %v163_v3 = vpop.eup %162 }
   0xd   :  { %v29_v4 = vld.sshfl [vmem:[#allocation1] sm:$0xff pattern:$0x75316420]  ;;  %v30_v5 = vld.sshfl [vmem:[#allocation1 + $0x8] sm:$0xff pattern:$0x75316420]  ;;  %vm66_vm1 = vweird.f32 %v163_v3 }
   0xe   :  { %39 = vst [vmem:[%s240_s1] sm:$0xf] %v29_v4  ;;  %v62_v6 = vmul.f32 2.0, %v163_v3  ;;  %v33_v7 = vld.sshfl [vmem:[#allocation1 + $0x10] sm:$0xff pattern:$0x75316420] }
   0xf   :  { %40 = vst [vmem:[%s240_s1 + $0x8] sm:$0xf] %v30_v5  ;;  %v34_v8 = vld.sshfl [vmem:[#allocation1 + $0x18] sm:$0xff pattern:$0x75316420] }
  0x10   :  { %41 = vst [vmem:[%s240_s1 + $0x10] sm:$0xf] %v33_v7  ;;  %v63_v9 = vsub.f32 1.0, %v62_v6 }
  0x11   :  { %42 = vst [vmem:[%s240_s1 + $0x18] sm:$0xf] %v34_v8 }
  0x12   :  { %43 = vst [vmem:[#allocation1] ss:$2 sm:$0xff] %v24_v0  ;;  %v64_v10 = vmul.f32 %v163_v3, %v63_v9 }
  0x13   :  { %47 = vst [vmem:[#allocation1 + $0x10] ss:$2 sm:$0xff] %v25_v1 }
  0x14   :  { %v65_v17 = vadd.f32 %v163_v3, %v64_v10 }
  0x16   :  { %v67_v24 = vsel %vm66_vm1, %v163_v3, %v65_v17 }
  0x19   :  { %v44_v13 = vld.sshfl [vmem:[#allocation1] sm:$0xff pattern:$0x75316420]  ;;  %v45_v14 = vld.sshfl [vmem:[#allocation1 + $0x8] sm:$0xff pattern:$0x75316420] }
  0x1a   :  { %v48_v15 = vld.sshfl [vmem:[#allocation1 + $0x10] sm:$0xff pattern:$0x75316420]  ;;  %v49_v16 = vld.sshfl [vmem:[#allocation1 + $0x18] sm:$0xff pattern:$0x75316420] }
  0x1b   :  { %v55_v18 = vsel %vm54_vm0, %v44_v13, 0.0  ;;  %v56_v19 = vsel %vm54_vm0, %v48_v15, 0.0  ;;  %v58_v20 = vsel %vm54_vm0, %v45_v14, 0.0  ;;  %v59_v21 = vsel %vm54_vm0, %v49_v16, 0.0  ;;  %74 = vst [vmem:[#allocation1] ss:$2 sm:$0xff] %v70_v11 }
  0x1c   :  { %78 = vst [vmem:[#allocation1 + $0x10] ss:$2 sm:$0xff] %v71_v12  ;;  %v57_v22 = vadd.f32 %v56_v19, %v55_v18  ;;  %v60_v23 = vadd.f32 %v59_v21, %v58_v20  ;;  %v139_v13 = vlaneseq }
  0x1e   :  { %v68_v25 = vmul.f32 %v67_v24, %v57_v22  ;;  %v69_v26 = vmul.f32 %v67_v24, %v60_v23  ;;  %vm141_vm6 = vcmp.lt.s32.totalorder %v139_v13, 256 }
  0x20   :  { %v93_v37 = vmul.f32 %v68_v25, %v68_v25  ;;  %v94_v38 = vmul.f32 %v69_v26, %v69_v26 }
  0x22   :  { %v75_v27 = vld.sshfl [vmem:[#allocation1] sm:$0xff pattern:$0x75316420]  ;;  %v76_v28 = vld.sshfl [vmem:[#allocation1 + $0x8] sm:$0xff pattern:$0x75316420] }
  0x23   :  { %v79_v29 = vld.sshfl [vmem:[#allocation1 + $0x10] sm:$0xff pattern:$0x75316420]  ;;  %v80_v30 = vld.sshfl [vmem:[#allocation1 + $0x18] sm:$0xff pattern:$0x75316420] }
  0x24   :  { %v85_v31 = vsel %vm54_vm0, %v75_v27, 0.0  ;;  %v86_v32 = vsel %vm54_vm0, %v79_v29, 0.0  ;;  %v88_v33 = vsel %vm54_vm0, %v76_v28, 0.0  ;;  %v89_v34 = vsel %vm54_vm0, %v80_v30, 0.0 }
  0x25   :  { %v87_v35 = vadd.f32 %v86_v32, %v85_v31  ;;  %v90_v36 = vadd.f32 %v89_v34, %v88_v33 }
  0x27   :  { %v91_v39 = vmul.f32 %v87_v35, %v67_v24  ;;  %v92_v40 = vmul.f32 %v90_v36, %v67_v24 }
  0x29   :  { %v95_v41 = vsub.f32 %v91_v39, %v93_v37  ;;  %v96_v42 = vsub.f32 %v92_v40, %v94_v38 }
  0x2b   :  { %v97_v43 = vmax.f32 %v95_v41, 0.0  ;;  %v98_v44 = vmax.f32 %v96_v42, 0.0 }
  0x2d   :  { %v99_v45 = vadd.f32 1e-08, %v97_v43  ;;  %v100_v46 = vadd.f32 1e-08, %v98_v44 }
  0x2f   :  { %164 = vrsqrt.f32 %v99_v45  ;;  %vm108_vm2 = vcmp.eq.f32.partialorder %v99_v45, inf  ;;  %v111_v58 = vand.u32 2147483648, %v99_v45  ;;  %vm110_vm3 = vcmp.eq.f32.partialorder %v99_v45, 0.0 }
  0x30   :  { %166 = vrsqrt.f32 %v100_v46  ;;  %vm120_vm4 = vcmp.eq.f32.partialorder %v100_v46, inf  ;;  %v123_v61 = vand.u32 2147483648, %v100_v46  ;;  %vm122_vm5 = vcmp.eq.f32.partialorder %v100_v46, 0.0 }
  0x35   :  { %v165_v47 = vpop.eup %164 }
  0x36   :  { %v167_v48 = vpop.eup %166  ;;  %v102_v49 = vmul.f32 %v165_v47, %v99_v45 }
  0x37   :  { %v114_v50 = vmul.f32 %v167_v48, %v100_v46 }
  0x38   :  { %v103_v51 = vmul.f32 %v165_v47, %v102_v49 }
  0x39   :  { %v115_v52 = vmul.f32 %v167_v48, %v114_v50 }
  0x3a   :  { %v104_v53 = vmul.f32 0.5, %v103_v51 }
  0x3b   :  { %v116_v54 = vmul.f32 0.5, %v115_v52 }
  0x3c   :  { %v105_v55 = vsub.f32 1.5, %v104_v53 }
  0x3d   :  { %v117_v56 = vsub.f32 1.5, %v116_v54 }
  0x3e   :  { %v106_v57 = vmul.f32 %v165_v47, %v105_v55 }
  0x3f   :  { %v118_v59 = vmul.f32 %v167_v48, %v117_v56 }
  0x40   :  { %v107_v60 = vmul.f32 %v106_v57, %v99_v45 }
  0x41   :  { %v119_v62 = vmul.f32 %v118_v59, %v100_v46 }
  0x42   :  { %v109_v63 = vsel %vm108_vm2, %v99_v45, %v107_v60 }
  0x43   :  { %v112_v0 = vsel %vm110_vm3, %v111_v58, %v109_v63  ;;  %v121_v1 = vsel %vm120_vm4, %v100_v46, %v119_v62 }
  0x44   :  { %v124_v2 = vsel %vm122_vm5, %v123_v61, %v121_v1  ;;  %v125_v3 = vsel %vm54_vm0, %v112_v0, 0.0 }
  0x45   :  { %v126_v4 = vsel %vm54_vm0, %v124_v2, 0.0 }
  0x46   :  { %v127_v5 = vadd.f32 %v126_v4, %v125_v3 }
  0x48   :  { %128 = vadd.xlane.f32.xlu0 %v127_v5 }
  0xbb   :  { %v129_v6 = vpop.xlane.xlu0 %128 }
  0xbc   :  { %v130_v7 = vrot.slane %v129_v6, 4 }
  0xbe   :  { %v131_v8 = vadd.f32 %v130_v7, %v129_v6 }
  0xc0   :  { %v132_v9 = vrot.slane %v131_v8, 2 }
  0xc2   :  { %v133_v10 = vadd.f32 %v132_v9, %v131_v8 }
  0xc4   :  { %v134_v11 = vrot.slane %v133_v10, 1 }
  0xc6   :  { %v135_v12 = vadd.f32 %v134_v11, %v133_v10 }
  0xc8   :  { %156 = vpush %v135_v12 }
  0xf9   :  { %s157_s20 = spop %156 }
  0xfa   :  { %s137_s21 = smul.f32 0.0009765625, %s157_s20 }
  0xfc   :  { %v138_v14 = vstv %s137_s21 }
  0xfd   :  { %154 = vst.msk [vmem:[%s240_s1 + $0x4] ss:$8 sm:$0x3] %vm141_vm6, %v138_v14 }
  0xfe   :  { %155 = vst.msk [vmem:[%s240_s1 + $0x14] ss:$8 sm:$0x3] %vm141_vm6, %v138_v14 }
  0xff   :  { %153 = vsyncpa [#allocation3], 1 }

</bundles_post_ra>
